<compile_context>
chip_gen: v6e
topology: v6e:2x2x1
jax: 0.10.0
libtpu: 0.0.40
codegen_flags: <defaults>
</compile_context>

<pallas_src>
import jax
import jax.numpy as jnp
from jax import lax
from jax.experimental import pallas as pl
from jax.experimental.pallas import tpu as pltpu


def relation_tagger_kernel(enc_ref, col_ref, v_ref, c_ref, out_ref):
    """out[0, k, l, s] = col[l] * (enc[s, :] . v[k, :] + c[k])  for k in {0, 1}."""
    f32 = jnp.float32
    enc_blk = enc_ref[0]                           # (tS, H) bf16
    v = v_ref[0]                                   # (2, H)  bf16
    # Contract over H with both operands un-transposed: (2, H) x (tS, H) -> (2, tS).
    dn = (((1,), (1,)), ((), ()))
    a = lax.dot_general(v, enc_blk, dn, preferred_element_type=f32) + c_ref[0]  # (2, tS)
    col = col_ref[0]                               # (L, 1) f32
    # Dense, lane-aligned full-tile stores of the two outer products.
    out_ref[0, 0, :, :] = (col * a[0:1, :]).astype(out_ref.dtype)
    out_ref[0, 1, :, :] = (col * a[1:2, :]).astype(out_ref.dtype)


def experimental_relation_tagger(enc, rel_embeds, params, *, s_tile=1024,
                                 out_dtype=jnp.float32):
    B, S, H = enc.shape
    Lr = rel_embeds.shape[1]
    field = params["field_embeddings"]            # (1, F, H)
    F = field.shape[1]
    L = F + Lr
    f32, bf16 = jnp.float32, jnp.bfloat16

    enc_f = enc.astype(f32)
    rel_f = rel_embeds.astype(f32)
    field2 = field[0].astype(f32)                 # (F, H)

    # ---- j-invariant per-batch precompute (tiny; done once, f32, in XLA) ----------
    # Row factor: col = [ sum_h field ; sum_h (rel @ value_w^T + value_b) ].
    field_rowsum = jnp.sum(field2, axis=-1)                              # (F,)
    vcol = jnp.sum(params["value_w"].astype(f32), axis=0)                # (H,)
    vb_sum = jnp.sum(params["value_b"].astype(f32))                      # scalar
    val_rowsum = rel_f @ vcol + vb_sum                                   # (B, Lr)
    col = jnp.concatenate(
        [jnp.broadcast_to(field_rowsum[None, :], (B, F)), val_rowsum], axis=1
    )[:, :, None]                                                        # (B, L, 1)

    # Column factor folded through head / label / tail projections:
    #   r_b  = sum_n field + (sum_n enc_b) @ head_W^T + S * head_b
    #   u_kb = r_b @ W_k ; v_kb = u_kb @ tail_W ; c_kb = u_kb . tail_b
    enc_colsum = jnp.sum(enc_f, axis=1)                                  # (B, H)
    r = (jnp.sum(field2, axis=0)[None, :]
         + enc_colsum @ params["head_w"].astype(f32).T
         + f32(S) * params["head_b"].astype(f32))                        # (B, H)
    w = jnp.stack([params["w0"], params["w1"]], axis=0).astype(f32)      # (2, H, H)
    u = jnp.einsum('bh,khi->bki', r, w)                                  # (B, 2, H)
    v = jnp.einsum('bkh,hi->bki', u, params["tail_w"].astype(f32))       # (B, 2, H)
    c = jnp.einsum('bkh,h->bk', u,
                   params["tail_b"].astype(f32).reshape(-1))[:, :, None] # (B, 2, 1)

    # ---- S tiling: pad S up to a multiple of the tile when tiling is needed -------
    if S > s_tile:
        t_s = s_tile
        s_pad = ((S + t_s - 1) // t_s) * t_s
        if s_pad != S:
            enc_f = jnp.pad(enc_f, ((0, 0), (0, s_pad - S), (0, 0)))
    else:
        t_s = S
        s_pad = S
    n_s = s_pad // t_s

    enc_b16 = enc_f.astype(bf16)
    v_b16 = v.astype(bf16)

    out = pl.pallas_call(
        relation_tagger_kernel,
        out_shape=jax.ShapeDtypeStruct((B, 2, L, s_pad), out_dtype),
        grid_spec=pltpu.PrefetchScalarGridSpec(
            num_scalar_prefetch=0,
            grid=(B, n_s),
            in_specs=[
                pl.BlockSpec((1, t_s, H), lambda b, j: (b, j, 0)),   # enc S-tile
                pl.BlockSpec((1, L, 1), lambda b, j: (b, 0, 0)),     # col  (per-batch)
                pl.BlockSpec((1, 2, H), lambda b, j: (b, 0, 0)),     # v_k  (per-batch)
                pl.BlockSpec((1, 2, 1), lambda b, j: (b, 0, 0)),     # c_k  (per-batch)
            ],
            out_specs=pl.BlockSpec((1, 2, L, t_s), lambda b, j: (b, 0, 0, j)),
        ),
        compiler_params=pltpu.CompilerParams(
            dimension_semantics=("parallel", "parallel"),
            vmem_limit_bytes=48 * 1024 * 1024),
    )(enc_b16, col, v_b16, c)

    if s_pad != S:
        out = out[..., :S]
    return out


def reference_jax(enc, rel, p):
    """Pure-JAX mirror of the PyTorch forward (for verification)."""
    eh = enc @ p["head_w"].T + p["head_b"]
    et = enc @ p["tail_w"].T + p["tail_b"]
    val = rel @ p["value_w"].T + p["value_b"]
    B = enc.shape[0]
    field = jnp.broadcast_to(p["field_embeddings"],
                             (B,) + p["field_embeddings"].shape[1:])
    enc_head = jnp.concatenate([field, eh], axis=1)
    value = jnp.concatenate([field, val], axis=1)
    att0 = jnp.matmul(enc_head, jnp.swapaxes(et @ p["w0"].T, 1, 2))
    att1 = jnp.matmul(enc_head, jnp.swapaxes(et @ p["w1"].T, 1, 2))
    s0 = jnp.einsum('bnm,blh->blm', att0, value)
    s1 = jnp.einsum('bnm,blh->blm', att1, value)
    return jnp.concatenate([s0[:, None], s1[:, None]], axis=1)


if __name__ == "__main__":
    B, S, Lr, H, F = 2, 8, 8, 32, 4  # batch, enc seq, rel seq, hidden, n_fields

    key = jax.random.PRNGKey(0)
    ks = jax.random.split(key, 13)
    lim = 1.0 / jnp.sqrt(H)

    params = {
        "head_w": jax.random.uniform(ks[0], (H, H), jnp.float32, -lim, lim),
        "head_b": jax.random.uniform(ks[1], (1, H), jnp.float32, -lim, lim),
        "tail_w": jax.random.uniform(ks[2], (H, H), jnp.float32, -lim, lim),
        "tail_b": jax.random.uniform(ks[3], (1, H), jnp.float32, -lim, lim),
        "value_w": jax.random.uniform(ks[4], (H, H), jnp.float32, -lim, lim),
        "value_b": jax.random.uniform(ks[5], (1, H), jnp.float32, -lim, lim),
        # torch.rand -> uniform [0, 1)
        "field_embeddings": jax.random.uniform(ks[6], (1, F, H), jnp.float32),
        "w0": jax.random.uniform(ks[7], (H, H), jnp.float32, -lim, lim),
        "w1": jax.random.uniform(ks[8], (H, H), jnp.float32, -lim, lim),
    }

    enc = jax.random.normal(ks[9], (B, S, H), jnp.float32)
    rel_embeds = jax.random.normal(ks[10], (B, Lr, H), jnp.float32)

    out = experimental_relation_tagger(enc, rel_embeds, params)
    out = jax.block_until_ready(out)
    assert out.shape == (B, 2, F + Lr, S), out.shape

    # Reference in f32; the kernel only rounds enc and the folded (2,H) vectors to
    # bf16 (f32 accumulation), so a scale-normalized max-error check with a 3e-2
    # relative tolerance is robust to MXU accumulation/ordering differences while
    # still catching real bugs.
    ref = reference_jax(enc, rel_embeds, params)
    scale = float(jnp.max(jnp.abs(ref)))
    err = float(jnp.max(jnp.abs(out - ref)))
    assert err <= 3e-2 * scale + 1e-3, (err, scale)

    print("KERNEL_OK")
</pallas_src>

<mosaic_0001>
module attributes {stable_mosaic.version = 11 : i64} {
  func.func @relation_tagger_kernel(%arg0: i32, %arg1: i32, %arg2: memref<1x8x32xbf16, #tpu.memory_space<vmem>>, %arg3: memref<1x12x1xf32, #tpu.memory_space<vmem>>, %arg4: memref<1x2x32xbf16, #tpu.memory_space<vmem>>, %arg5: memref<1x2x1xf32, #tpu.memory_space<vmem>>, %arg6: memref<1x2x12x8xf32, #tpu.memory_space<vmem>>) attributes {dimension_semantics = [#tpu.dimension_semantics<parallel>, #tpu.dimension_semantics<parallel>], iteration_bounds = array<i64: 2, 1>, scalar_prefetch = 0 : i64, scratch_operands = 0 : i64, tpu.core_type = #tpu.core_type<tc>, window_params = [{transform_indices = @transform_0, window_bounds = array<i64: 1, 8, 32>}, {transform_indices = @transform_1, window_bounds = array<i64: 1, 12, 1>}, {transform_indices = @transform_2, window_bounds = array<i64: 1, 2, 32>}, {transform_indices = @transform_3, window_bounds = array<i64: 1, 2, 1>}, {transform_indices = @transform_4, window_bounds = array<i64: 1, 2, 12, 8>}]} {
    %c0 = arith.constant 0 : index
    %c0_0 = arith.constant 0 : index
    %c0_1 = arith.constant 0 : index
    %0 = vector.load %arg2[%c0, %c0_0, %c0_1] : memref<1x8x32xbf16, #tpu.memory_space<vmem>>, vector<1x8x32xbf16>
    %1 = vector.shape_cast %0 : vector<1x8x32xbf16> to vector<8x32xbf16>
    %c0_2 = arith.constant 0 : index
    %c0_3 = arith.constant 0 : index
    %c0_4 = arith.constant 0 : index
    %2 = vector.load %arg4[%c0_2, %c0_3, %c0_4] : memref<1x2x32xbf16, #tpu.memory_space<vmem>>, vector<1x2x32xbf16>
    %3 = vector.shape_cast %2 : vector<1x2x32xbf16> to vector<2x32xbf16>
    %cst = arith.constant dense<0.000000e+00> : vector<2x8xf32>
    %4 = tpu.matmul %3, %1, %cst {dimension_numbers = #tpu.dot_dimension_numbers<[1], [1], [0], [0], [0, 0, 1, 0], [], []>} : vector<2x32xbf16>, vector<8x32xbf16>, vector<2x8xf32> -> vector<2x8xf32>
    %c0_5 = arith.constant 0 : index
    %c0_6 = arith.constant 0 : index
    %c0_7 = arith.constant 0 : index
    %5 = vector.load %arg5[%c0_5, %c0_6, %c0_7] : memref<1x2x1xf32, #tpu.memory_space<vmem>>, vector<1x2x1xf32>
    %6 = vector.shape_cast %5 : vector<1x2x1xf32> to vector<2x1xf32>
    %7 = vector.broadcast %6 : vector<2x1xf32> to vector<2x8xf32>
    %8 = arith.addf %4, %7 : vector<2x8xf32>
    %c0_8 = arith.constant 0 : index
    %c0_9 = arith.constant 0 : index
    %c0_10 = arith.constant 0 : index
    %9 = vector.load %arg3[%c0_8, %c0_9, %c0_10] : memref<1x12x1xf32, #tpu.memory_space<vmem>>, vector<1x12x1xf32>
    %10 = vector.shape_cast %9 : vector<1x12x1xf32> to vector<12x1xf32>
    %11 = vector.extract_strided_slice %8 {offsets = [0, 0], sizes = [1, 8], strides = [1, 1]} : vector<2x8xf32> to vector<1x8xf32>
    %12 = vector.broadcast %10 : vector<12x1xf32> to vector<12x8xf32>
    %13 = vector.broadcast %11 : vector<1x8xf32> to vector<12x8xf32>
    %14 = arith.mulf %12, %13 : vector<12x8xf32>
    %c0_11 = arith.constant 0 : index
    %c0_12 = arith.constant 0 : index
    %c0_13 = arith.constant 0 : index
    %c0_14 = arith.constant 0 : index
    %15 = vector.load %arg6[%c0_11, %c0_12, %c0_13, %c0_14] : memref<1x2x12x8xf32, #tpu.memory_space<vmem>>, vector<1x1x12x8xf32>
    %16 = vector.shape_cast %15 : vector<1x1x12x8xf32> to vector<12x8xf32>
    %17 = vector.shape_cast %14 : vector<12x8xf32> to vector<1x1x12x8xf32>
    tpu.vector_store %arg6[%c0_11, %c0_12, %c0_13, %c0_14], %17 {strides = array<i32>} : memref<1x2x12x8xf32, #tpu.memory_space<vmem>>, vector<1x1x12x8xf32>,
    %18 = vector.extract_strided_slice %8 {offsets = [1, 0], sizes = [1, 8], strides = [1, 1]} : vector<2x8xf32> to vector<1x8xf32>
    %19 = vector.broadcast %10 : vector<12x1xf32> to vector<12x8xf32>
    %20 = vector.broadcast %18 : vector<1x8xf32> to vector<12x8xf32>
    %21 = arith.mulf %19, %20 : vector<12x8xf32>
    %c0_15 = arith.constant 0 : index
    %c1 = arith.constant 1 : index
    %c0_16 = arith.constant 0 : index
    %c0_17 = arith.constant 0 : index
    %22 = vector.load %arg6[%c0_15, %c1, %c0_16, %c0_17] : memref<1x2x12x8xf32, #tpu.memory_space<vmem>>, vector<1x1x12x8xf32>
    %23 = vector.shape_cast %22 : vector<1x1x12x8xf32> to vector<12x8xf32>
    %24 = vector.shape_cast %21 : vector<12x8xf32> to vector<1x1x12x8xf32>
    tpu.vector_store %arg6[%c0_15, %c1, %c0_16, %c0_17], %24 {strides = array<i32>} : memref<1x2x12x8xf32, #tpu.memory_space<vmem>>, vector<1x1x12x8xf32>,
    return
  }
  func.func @transform_0(%arg0: i32, %arg1: i32) -> (i32, i32, i32) {
    %c0_i32 = arith.constant 0 : i32
    %c0_i32_0 = arith.constant 0 : i32
    return %arg0, %arg1, %c0_i32 : i32, i32, i32
  }
  func.func @transform_1(%arg0: i32, %arg1: i32) -> (i32, i32, i32) {
    %c0_i32 = arith.constant 0 : i32
    %c0_i32_0 = arith.constant 0 : i32
    %c0_i32_1 = arith.constant 0 : i32
    return %arg0, %c0_i32, %c0_i32_0 : i32, i32, i32
  }
  func.func @transform_2(%arg0: i32, %arg1: i32) -> (i32, i32, i32) {
    %c0_i32 = arith.constant 0 : i32
    %c0_i32_0 = arith.constant 0 : i32
    %c0_i32_1 = arith.constant 0 : i32
    return %arg0, %c0_i32, %c0_i32_0 : i32, i32, i32
  }
  func.func @transform_3(%arg0: i32, %arg1: i32) -> (i32, i32, i32) {
    %c0_i32 = arith.constant 0 : i32
    %c0_i32_0 = arith.constant 0 : i32
    %c0_i32_1 = arith.constant 0 : i32
    return %arg0, %c0_i32, %c0_i32_0 : i32, i32, i32
  }
  func.func @transform_4(%arg0: i32, %arg1: i32) -> (i32, i32, i32, i32) {
    %c0_i32 = arith.constant 0 : i32
    %c0_i32_0 = arith.constant 0 : i32
    %c0_i32_1 = arith.constant 0 : i32
    return %arg0, %c0_i32, %c0_i32_0, %arg1 : i32, i32, i32, i32
  }
}

</mosaic_0001>

<bundles_post_ra>
// kernel: tpu_custom_call.1
= control target key start
LH: loop header
LB: loop body
LE: loop exit
PB: predicated region body
PF: predicated region fallthrough
CT: control target
= control target key end

     0   :  { %s584_s15 = smov 0   ;;  %s586_s16 = smov 0   ;;  %s635_s0 = inlined_call_operand.vmem [shape: bf16[2,8,32], index: 0, kind: input, shape index: {}]   ;;  %s636_s1 = inlined_call_operand.vmem [shape: f32[2,12,1], index: 1, kind: input, shape index: {}]   ;;  %s637_s2 = inlined_call_operand.vmem [shape: bf16[2,2,32], index: 2, kind: input, shape index: {}]   ;;  %s638_s3 = inlined_call_operand.vmem [shape: f32[2,2,1], index: 3, kind: input, shape index: {}]   ;;  %s639_s4 = inlined_call_operand.vmem [shape: f32[2,2,12,8], index: 4, kind: output, shape index: {}]  }
   0x1   :  { %s588_s17 = smov 0  }
   0x2 LB: > { %s26_s18 = sadd.s32 1, %s550_s16  ;;  %p481_p0 = scmp.ge.s32.totalorder %s554_s17, 1  ;;  %s554_s17 = sphi %s588_s17, %s14_s17   ;;  %s550_s16 = sphi %s586_s16, %s641_s16   ;;  %s546_s15 = sphi %s584_s15, %s640_s15  }
   0x3   : > { %p28_p1 = scmp.ge.s32.totalorder %s26_s18, 2  ;;  %p207_p2 = scmp.lt.s32.totalorder %s554_s17, 3 }
   0x5   : > { %s643_s18 = smov (%p28_p1, %s26_s18), 0  ;;  %p208_p3 = pnand %p481_p0, %p207_p2 }
   0x6   : > { %p250_p4 = scmp.lt.s32.totalorder (!%p208_p3), %s546_s15, 1 }
   0x7   : > { %211 = sbr.rel (%p208_p3) target bundleno = 225 (0xe1), region = 36 }
   0xc   : > { %v556_v0 = vmov 0.0   ;;  %vm557_vm0 = vmmov 0   ;;  %s645_s15 = smov (!%p250_p4, %s546_s15), 1  ;;  %v558_v1 = vmov 0   ;;  %vm286_vm1 = vcmask 261120  }
   0xd   : > { %497 = vmatprep.subr.bf16.mxu0 %v556_v0  ;;  %499 = vmatprep.mubr.msk.bf16.mxu0 %vm557_vm0, %v556_v0  ;;  %s482_s19 = sshll.u32 %s645_s15, 2  ;;  %s485_s23 = sshll.u32 %s645_s15, 1  ;;  %v345_v8 = vlaneseq  ;;  %vm351_vm2 = vcmask 64512   ;;  %vm353_vm3 = vcmask 60416  }
   0xe   : > { %530 = vset.pattern.permute.xlu0 %v558_v1  ;;  %531 = vset.pattern.permute.xlu1 %v558_v1  ;;  %s256_s22 = scalar_lea.vmem %s635_s0, %s482_s19  ;;  %s268_s26 = scalar_lea.vmem %s638_s3, %s485_s23 }
   0xf   : > { %v278_v2 = vld [vmem:[%s256_s22] sm:$0xf]  ;;  %s493_s27 = sshll.u32 %s645_s15, 4  ;;  %s264_s7 = scalar_lea.vmem %s637_s2, %s645_s15  ;;  %v346_v9 = vshrl.u32 %v345_v8, 7 }
  0x10   : > { %v291_v3 = vsel %vm286_vm1, %v278_v2, 0  ;;  %v280_v4 = vld [vmem:[%s268_s26] sm:$0x3]  ;;  %s261_s30 = scalar_lea.vmem %s636_s1, %s493_s27  ;;  %s494_s8 = sshll.u32 %s645_s15, 5 }
  0x11   : > { %498 = vmatpush3.bf16.xpose.msra.mxu0 %v291_v3  ;;  %283 = vperm.xlu0 %530, %v280_v4   ;;  %v334_v5 = vld [vmem:[%s261_s30 + $0x8] sm:$0xf]  ;;  %v333_v6 = vld [vmem:[%s261_s30] sm:$0xff]  ;;  %v347_v11 = vsub.s32 0, %v346_v9  ;;  %v357_v12 = vsub.s32 1, %v346_v9  ;;  %s276_s11 = scalar_lea.vmem %s639_s4, %s494_s8 }
  0x12   : > { %342 = vperm.xlu1 %531, %v334_v5   ;;  %v279_v7 = vld [vmem:[%s264_s7] sm:$0x1] }
  0x15   : > { %337 = vperm.xlu0 %530, %v333_v6  }
  0x18   : > { %500 = vmatmul.mubr.msk.bf16.vlgmr.msra.gmra.mxu0 %vm286_vm1, %v279_v7 }
  0x8c   : > { %v284_v10 = vpop.permute.xlu0 %283 }
  0x8d   : > { %v343_v16 = vpop.permute.xlu1 %342 }
  0x90   : > { %v338_v19 = vpop.permute.xlu0 %337 }
  0xd8   : > { %v327_v13 = vpop.f32.mrf.mxu0 }
  0xd9   : > { %v328_v14 = vadd.f32 %v327_v13, %v284_v10 }
  0xda   : > { %v501_v15 = vpop.f32.mrf.mxu0 }
  0xdb   : > { %v348_v17 = vrot.slane %v328_v14, %v347_v11  ;;  %v358_v18 = vrot.slane %v328_v14, %v357_v12 }
  0xdc   : > { %v330_v20 = vpop.f32.mrf.mxu0 }
  0xdd   : > { %v349_v21 = vmul.f32 %v348_v17, %v338_v19  ;;  %v350_v22 = vmul.f32 %v348_v17, %v343_v16  ;;  %v359_v23 = vmul.f32 %v358_v18, %v338_v19  ;;  %v360_v24 = vmul.f32 %v358_v18, %v343_v16 }
  0xde   : > { %v502_v25 = vpop.f32.mrf.mxu0 }
  0xdf   : > { %352 = vst.msk [vmem:[%s276_s11] sm:$0xff] %vm351_vm2, %v349_v21  ;;  %489 = vst.msk [vmem:[%s276_s11 + $0x10] sm:$0xff] %vm351_vm2, %v359_v23 }
  0xe0   : > { %354 = vst.msk [vmem:[%s276_s11 + $0x8] sm:$0xf] %vm353_vm3, %v350_v22  ;;  %490 = vst.msk [vmem:[%s276_s11 + $0x18] sm:$0xf] %vm353_vm3, %v360_v24 }
  0xe1 PF: > { %s14_s17 = sadd.s32 1, %s554_s17   ;;  %s640_s15 = smov %s550_s16 }
  0xe2   : > { %p11_p5 = scmp.ge.s32.totalorder %s14_s17, 4   ;;  %s641_s16 = smov %s643_s18 }
  0xe4   :  { %13 = sbr.rel (!%p11_p5) target bundleno = 2 (0x2), region = 76 }

</bundles_post_ra>
